<compile_context>
chip_gen: v6e
topology: v6e:2x2x1
jax: 0.10.0
libtpu: 0.0.40
codegen_flags: <defaults>
</compile_context>

<pallas_src>
import functools

import jax
import jax.numpy as jnp
from jax import lax
from jax.experimental import pallas as pl
from jax.experimental.pallas import tpu as pltpu


def _round_up(x, m):
    return ((x + m - 1) // m) * m


# ----------------------------------------------------------------------------
# Kernel 1: batched encoder pre-pass (MLP + LayerNorm + x @ W_ih + biases)
# ----------------------------------------------------------------------------
def _encoder_kernel(x_ref, w1_ref, w2_ref, w3_ref, wih_ref, consts_ref,
                    gates_ref, *, h_features, h_pad):
    f32 = jnp.float32
    bf16 = jnp.bfloat16

    def swish(v):
        return v * jax.nn.sigmoid(v)

    # Packed constant rows: 0..2 = b1,b2,b3 ; 3 = gamma ; 4 = beta ; 5 = b_ih+b_hh
    b1 = consts_ref[0:1, :h_pad]
    b2 = consts_ref[1:2, :h_pad]
    b3 = consts_ref[2:3, :h_pad]
    gamma = consts_ref[3:4, :h_pad]
    beta = consts_ref[4:5, :h_pad]
    bl = consts_ref[5:6, :]

    x = x_ref[...]                                                   # (TM, S) bf16
    h = swish(jnp.dot(x, w1_ref[...], preferred_element_type=f32) + b1)
    h = swish(jnp.dot(h.astype(bf16), w2_ref[...], preferred_element_type=f32) + b2)
    h = swish(jnp.dot(h.astype(bf16), w3_ref[...], preferred_element_type=f32) + b3)

    # LayerNorm over the REAL feature count.  Padded lanes of h are exactly 0
    # (zero weight columns survive the bf16 cast exactly, biases are 0, and
    # swish(0) = 0), so the unmasked mean is exact; variance is masked.
    inv_h = 1.0 / float(h_features)
    mu = jnp.sum(h, axis=-1, keepdims=True) * inv_h
    d = h - mu
    if h_pad == h_features:
        var = jnp.sum(d * d, axis=-1, keepdims=True) * inv_h
    else:
        mask = (lax.broadcasted_iota(jnp.int32, (1, h_pad), 1)
                < h_features).astype(f32)
        var = jnp.sum(d * d * mask, axis=-1, keepdims=True) * inv_h
    # gamma/beta are zero in padded lanes -> padded lanes of xe are exactly 0.
    xe = d * lax.rsqrt(var + 1e-5) * gamma + beta

    gates = jnp.dot(xe.astype(bf16), wih_ref[...],
                    preferred_element_type=f32) + bl
    gates_ref[...] = gates.astype(gates_ref.dtype)                   # bf16 store


# ----------------------------------------------------------------------------
# Kernel 2: sequential LSTM recurrence + chunked value head
# ----------------------------------------------------------------------------
def _lstm_kernel(gates_ref, whh_ref, wv_ref, out_ref,
                 h_sc, c_sc, h_all_sc, *, t_chunk, l_pad, unroll):
    # New batch tile starts whenever the (arbitrary) time-chunk axis restarts.
    @pl.when(pl.program_id(1) == 0)
    def _():
        h_sc[...] = jnp.zeros(h_sc.shape, h_sc.dtype)
        c_sc[...] = jnp.zeros(c_sc.shape, c_sc.dtype)

    def step(t, carry):
        # Feed the MXU straight from VMEM each step: the (Lp, 4Lp) W_hh is never
        # held live in vregs across the serial loop (avoids regalloc spills on
        # the only non-parallelizable path).  All elementwise math stays f32.
        pre = (gates_ref[t].astype(jnp.float32)
               + jnp.dot(h_sc[...], whh_ref[...],
                         preferred_element_type=jnp.float32))
        i_g = jax.nn.sigmoid(pre[:, 0 * l_pad:1 * l_pad])
        f_g = jax.nn.sigmoid(pre[:, 1 * l_pad:2 * l_pad])
        g_g = jnp.tanh(pre[:, 2 * l_pad:3 * l_pad])
        o_g = jax.nn.sigmoid(pre[:, 3 * l_pad:4 * l_pad])
        c_new = f_g * c_sc[...] + i_g * g_g
        h_new = o_g * jnp.tanh(c_new)
        c_sc[...] = c_new
        h_sc[...] = h_new
        h_all_sc[t] = h_new                        # lane-dense (b_tile, Lp) store
        return carry

    lax.fori_loop(0, t_chunk, step, 0, unroll=unroll)

    # Value head once per chunk: lane reduction + one lane-dense
    # (t_chunk, b_tile) output store (batch on lanes; no size-1 trailing dim).
    out_ref[...] = jnp.sum(h_all_sc[...] * wv_ref[...], axis=-1)


# ----------------------------------------------------------------------------
# Wrapper
# ----------------------------------------------------------------------------
def recurrent_critic_forward(state, params):
    """state: (B, T, state_size) f32 -> value (B, T, 1) (or (B, 1) if T == 1)."""
    B, T, S = state.shape
    H = params["w1"].shape[1]
    L = params["whh"].shape[0]
    f32 = jnp.float32
    bf16 = jnp.bfloat16

    Hp = _round_up(H, 128)
    Lp = _round_up(L, 128)
    Bp = _round_up(B, 8)

    # ------------------ hardware-aware tiling decisions -------------------
    # Batch-tile split only where there are 2 TensorCores (v7x) AND the halved
    # tile is still a lane-dense multiple of 128 (keeps the MXU M-dim and the
    # output store dense).  v5e/v6e have 1 TC: splitting is pure overhead.
    n_cores = 1
    try:
        kind = jax.devices()[0].device_kind.lower()
        if "v7" in kind:
            n_cores = 2
    except Exception:
        n_cores = 1
    b_tile = Bp
    if n_cores >= 2 and Bp % 2 == 0 and (Bp // 2) % 128 == 0:
        b_tile = Bp // 2
    n_btiles = Bp // b_tile

    # t_chunk from a VMEM budget (conservative so it also fits v7x's 64 MiB):
    # double-buffered bf16 gates block + h history scratch + output blocks.
    bytes_per_step = (2 * b_tile * 4 * Lp * 2      # gates block, bf16, 2 buffers
                      + b_tile * Lp * 4            # h_all scratch
                      + 2 * b_tile * 4)            # output block, f32, 2 buffers
    vmem_budget = 16 * 1024 * 1024
    max_chunk = max(8, vmem_budget // bytes_per_step)
    if T <= max_chunk:
        t_chunk = T                 # single chunk; block spans the full T axis
    else:
        t_chunk = (max_chunk // 8) * 8   # multiple of 8 -> legal sublane tiling
    Tp = _round_up(T, t_chunk)
    n_tchunks = Tp // t_chunk

    # Unroll sized to the 64-vreg file: each unrolled step holds pre (b_tile x
    # 4Lp), four gates, c and h live; shrink the unroll as b_tile*Lp grows.
    if b_tile * Lp <= 8 * 128:
        unroll = min(t_chunk, 8)
    elif b_tile >= 64 or Lp >= 256:
        unroll = min(t_chunk, 2)
    else:
        unroll = min(t_chunk, 4)
    unroll = max(unroll, 1)

    # Encoder row tile = t_enc whole time steps (t_enc | Tp), targeting ~512
    # rows, so the (Tp*Bp, 4Lp) gates output reshapes to (Tp, Bp, 4Lp) for free
    # (no padding slice / extra HBM copy between the two kernels).
    t_enc = 1
    for d in range(Tp, 0, -1):
        if Tp % d == 0 and d * Bp <= 512:
            t_enc = d
            break
    tile_m = t_enc * Bp

    # ---------- pad parameters to hardware granules (zeros = exact) ----------
    def pad2(a, r, c):
        a = jnp.asarray(a, f32)
        return jnp.zeros((r, c), f32).at[:a.shape[0], :a.shape[1]].set(a)

    w1 = pad2(params["w1"], S, Hp).astype(bf16)
    w2 = pad2(params["w2"], Hp, Hp).astype(bf16)
    w3 = pad2(params["w3"], Hp, Hp).astype(bf16)

    # Gates laid out on lane-aligned Lp-wide slots: [i | f | g | o].
    wih_p = jnp.zeros((Hp, 4 * Lp), f32)
    whh_p = jnp.zeros((Lp, 4 * Lp), f32)
    bl_row = jnp.zeros((4 * Lp,), f32)
    wih_t = jnp.asarray(params["wih"], f32)
    whh_t = jnp.asarray(params["whh"], f32)
    bl_t = jnp.asarray(params["bl"], f32).reshape(-1)
    for g in range(4):
        wih_p = wih_p.at[:H, g * Lp:g * Lp + L].set(wih_t[:, g * L:(g + 1) * L])
        whh_p = whh_p.at[:L, g * Lp:g * Lp + L].set(whh_t[:, g * L:(g + 1) * L])
        bl_row = bl_row.at[g * Lp:g * Lp + L].set(bl_t[g * L:(g + 1) * L])
    wih_p = wih_p.astype(bf16)     # MXU-facing; W_hh stays f32 for the recurrence

    def row(a, width):
        a = jnp.asarray(a, f32).reshape(-1)
        return jnp.zeros((width,), f32).at[:a.shape[0]].set(a)

    # Pack the six small bias/scale vectors into one (8, 4Lp) block (1 DMA).
    consts = jnp.zeros((8, 4 * Lp), f32)
    consts = consts.at[0, :Hp].set(row(params["b1"], Hp))
    consts = consts.at[1, :Hp].set(row(params["b2"], Hp))
    consts = consts.at[2, :Hp].set(row(params["b3"], Hp))
    consts = consts.at[3, :Hp].set(row(params["gamma"], Hp))
    consts = consts.at[4, :Hp].set(row(params["beta"], Hp))
    consts = consts.at[5, :].set(bl_row)

    wv_row = jnp.zeros((1, Lp), f32).at[:, :L].set(
        jnp.asarray(params["wv"], f32)[:, 0][None, :])
    bv = jnp.asarray(params["bv"], f32).reshape(())    # scalar, added in wrapper

    # ---- input: pad (batch, time), time-major rows, cast to bf16 for MXU ----
    x = jnp.asarray(state, f32)
    if Bp != B or Tp != T:
        x = jnp.pad(x, ((0, Bp - B), (0, Tp - T), (0, 0)))
    x_rows = jnp.transpose(x, (1, 0, 2)).reshape(Tp * Bp, S).astype(bf16)

    # ---------------- kernel 1: all time-independent FLOPs ----------------
    enc = functools.partial(_encoder_kernel, h_features=H, h_pad=Hp)
    gates_flat = pl.pallas_call(
        enc,
        out_shape=jax.ShapeDtypeStruct((Tp * Bp, 4 * Lp), bf16),
        grid=(Tp // t_enc,),
        in_specs=[
            pl.BlockSpec((tile_m, S), lambda i: (i, 0)),         # x rows (bf16)
            pl.BlockSpec((S, Hp), lambda i: (0, 0)),             # w1 (bf16)
            pl.BlockSpec((Hp, Hp), lambda i: (0, 0)),            # w2 (bf16)
            pl.BlockSpec((Hp, Hp), lambda i: (0, 0)),            # w3 (bf16)
            pl.BlockSpec((Hp, 4 * Lp), lambda i: (0, 0)),        # wih (bf16)
            pl.BlockSpec((8, 4 * Lp), lambda i: (0, 0)),         # packed consts
        ],
        out_specs=pl.BlockSpec((tile_m, 4 * Lp), lambda i: (i, 0)),
        compiler_params=pltpu.CompilerParams(
            dimension_semantics=("parallel",),
            vmem_limit_bytes=32 * 1024 * 1024),
    )(x_rows, w1, w2, w3, wih_p, consts)

    gates = gates_flat.reshape(Tp, Bp, 4 * Lp)   # free reshape (row order (t, b))

    # ---------------- kernel 2: sequential recurrence + value head ----------------
    lstm = functools.partial(_lstm_kernel, t_chunk=t_chunk, l_pad=Lp,
                             unroll=unroll)
    out_tm = pl.pallas_call(
        lstm,
        out_shape=jax.ShapeDtypeStruct((Tp, Bp), f32),           # lane-dense output
        grid=(n_btiles, n_tchunks),
        in_specs=[
            pl.BlockSpec((t_chunk, b_tile, 4 * Lp), lambda b, t: (t, b, 0)),
            pl.BlockSpec((Lp, 4 * Lp), lambda b, t: (0, 0)),     # W_hh (f32)
            pl.BlockSpec((1, Lp), lambda b, t: (0, 0)),          # value-head row
        ],
        out_specs=pl.BlockSpec((t_chunk, b_tile), lambda b, t: (t, b)),
        scratch_shapes=[
            pltpu.VMEM((b_tile, Lp), f32),             # h state
            pltpu.VMEM((b_tile, Lp), f32),             # c state
            pltpu.VMEM((t_chunk, b_tile, Lp), f32),    # h history for value head
        ],
        compiler_params=pltpu.CompilerParams(
            dimension_semantics=("parallel", "arbitrary"),
            vmem_limit_bytes=32 * 1024 * 1024),
    )(gates, whh_p, wv_row)

    # value-head bias + layout plumbing done outside the kernels (tiny ops).
    out = (jnp.transpose(out_tm) + bv)[:B, :T][..., None]        # (B, T, 1)
    if T == 1:
        out = out[:, 0, :]                          # mirror lstm_out.squeeze(1)
    return out


# ----------------------------------------------------------------------------
# Deterministic parameter construction (mirrors the module's _init_weights)
# ----------------------------------------------------------------------------
def _orthogonal(key, rows, cols):
    n = max(rows, cols)
    a = jax.random.normal(key, (n, n), dtype=jnp.float32)
    q, r = jnp.linalg.qr(a)
    d = jnp.diagonal(r)
    q = q * jnp.where(d == 0, 1.0, jnp.sign(d))
    return q[:rows, :cols]


def make_params(state_size, hidden_size, lstm_size, key):
    keys = jax.random.split(key, 6)
    S, H, L = state_size, hidden_size, lstm_size
    # PyTorch Linear stores (out, in); we pass the transpose so kernels do x @ W.
    w1 = _orthogonal(keys[0], H, S).T          # (S, H)
    w2 = _orthogonal(keys[1], H, H).T          # (H, H)
    w3 = _orthogonal(keys[2], H, H).T          # (H, H)
    wih = _orthogonal(keys[3], 4 * L, H).T     # (H, 4L)   gate order i,f,g,o
    whh = _orthogonal(keys[4], 4 * L, L).T     # (L, 4L)
    wv = _orthogonal(keys[5], 1, L).T          # (L, 1)
    return {
        "w1": w1, "b1": jnp.zeros((1, H), jnp.float32),
        "w2": w2, "b2": jnp.zeros((1, H), jnp.float32),
        "w3": w3, "b3": jnp.zeros((1, H), jnp.float32),
        "gamma": jnp.ones((1, H), jnp.float32),
        "beta": jnp.zeros((1, H), jnp.float32),
        "wih": wih, "whh": whh,
        "bl": jnp.zeros((1, 4 * L), jnp.float32),   # b_ih + b_hh, both init to 0
        "wv": wv, "bv": jnp.zeros((1, 1), jnp.float32),
    }


# ----------------------------------------------------------------------------
# Pure-JAX f32 reference (mirrors the PyTorch forward)
# ----------------------------------------------------------------------------
def reference_forward(state, p):
    def swish(v):
        return v * jax.nn.sigmoid(v)

    x = swish(state @ p["w1"] + p["b1"][0])
    x = swish(x @ p["w2"] + p["b2"][0])
    x = swish(x @ p["w3"] + p["b3"][0])
    mu = x.mean(-1, keepdims=True)
    var = ((x - mu) ** 2).mean(-1, keepdims=True)
    x = (x - mu) / jnp.sqrt(var + 1e-5) * p["gamma"][0] + p["beta"][0]

    B, T, H = x.shape
    L = p["whh"].shape[0]
    h = jnp.zeros((B, L), jnp.float32)
    c = jnp.zeros((B, L), jnp.float32)
    outs = []
    for t in range(T):
        gates = x[:, t] @ p["wih"] + h @ p["whh"] + p["bl"][0]
        i = jax.nn.sigmoid(gates[:, :L])
        f = jax.nn.sigmoid(gates[:, L:2 * L])
        g = jnp.tanh(gates[:, 2 * L:3 * L])
        o = jax.nn.sigmoid(gates[:, 3 * L:])
        c = f * c + i * g
        h = o * jnp.tanh(c)
        outs.append(h)
    hs = jnp.stack(outs, axis=1)               # (B, T, L)
    out = hs @ p["wv"] + p["bv"][0]            # (B, T, 1)
    if T == 1:
        out = out[:, 0, :]
    return out


# ----------------------------------------------------------------------------
if __name__ == "__main__":
    B, T = 2, 8
    state_size, hidden_size, lstm_size = 16, 32, 32

    key = jax.random.PRNGKey(0)
    k_state, k_param = jax.random.split(key)
    state = jax.random.normal(k_state, (B, T, state_size), dtype=jnp.float32)
    params = make_params(state_size, hidden_size, lstm_size, k_param)

    out = recurrent_critic_forward(state, params)
    out = jax.block_until_ready(out)

    ref = jax.block_until_ready(reference_forward(state, params))
    assert out.shape == (B, T, 1), out.shape
    # Tolerance accounts for bf16 MXU inputs / bf16 gates intermediate vs the
    # pure-f32 reference (accumulation is f32 everywhere).
    assert jnp.allclose(out, ref, atol=5e-2, rtol=5e-2), (
        float(jnp.max(jnp.abs(out - ref))))

    print("KERNEL_OK")
</pallas_src>

<mosaic_0001>
module attributes {stable_mosaic.version = 11 : i64} {
  func.func @_encoder_kernel(%arg0: i32, %arg1: memref<64x16xbf16, #tpu.memory_space<vmem>>, %arg2: memref<16x128xbf16, #tpu.memory_space<vmem>>, %arg3: memref<128x128xbf16, #tpu.memory_space<vmem>>, %arg4: memref<128x128xbf16, #tpu.memory_space<vmem>>, %arg5: memref<128x512xbf16, #tpu.memory_space<vmem>>, %arg6: memref<8x512xf32, #tpu.memory_space<vmem>>, %arg7: memref<64x512xbf16, #tpu.memory_space<vmem>>) attributes {dimension_semantics = [#tpu.dimension_semantics<parallel>], iteration_bounds = array<i64: 1>, scalar_prefetch = 0 : i64, scratch_operands = 0 : i64, tpu.core_type = #tpu.core_type<tc>, window_params = [{transform_indices = @transform_0, window_bounds = array<i64: 64, 16>}, {pipeline_mode = #tpu.pipeline_mode<synchronous>, transform_indices = @transform_1, window_bounds = array<i64: 16, 128>}, {pipeline_mode = #tpu.pipeline_mode<synchronous>, transform_indices = @transform_2, window_bounds = array<i64: 128, 128>}, {pipeline_mode = #tpu.pipeline_mode<synchronous>, transform_indices = @transform_3, window_bounds = array<i64: 128, 128>}, {pipeline_mode = #tpu.pipeline_mode<synchronous>, transform_indices = @transform_4, window_bounds = array<i64: 128, 512>}, {pipeline_mode = #tpu.pipeline_mode<synchronous>, transform_indices = @transform_5, window_bounds = array<i64: 8, 512>}, {transform_indices = @transform_6, window_bounds = array<i64: 64, 512>}]} {
    %c0 = arith.constant 0 : index
    %c0_0 = arith.constant 0 : index
    %0 = vector.load %arg6[%c0, %c0_0] : memref<8x512xf32, #tpu.memory_space<vmem>>, vector<1x128xf32>
    %c1 = arith.constant 1 : index
    %c0_1 = arith.constant 0 : index
    %1 = vector.load %arg6[%c1, %c0_1] : memref<8x512xf32, #tpu.memory_space<vmem>>, vector<1x128xf32>
    %c2 = arith.constant 2 : index
    %c0_2 = arith.constant 0 : index
    %2 = vector.load %arg6[%c2, %c0_2] : memref<8x512xf32, #tpu.memory_space<vmem>>, vector<1x128xf32>
    %c3 = arith.constant 3 : index
    %c0_3 = arith.constant 0 : index
    %3 = vector.load %arg6[%c3, %c0_3] : memref<8x512xf32, #tpu.memory_space<vmem>>, vector<1x128xf32>
    %c4 = arith.constant 4 : index
    %c0_4 = arith.constant 0 : index
    %4 = vector.load %arg6[%c4, %c0_4] : memref<8x512xf32, #tpu.memory_space<vmem>>, vector<1x128xf32>
    %c5 = arith.constant 5 : index
    %c0_5 = arith.constant 0 : index
    %5 = vector.load %arg6[%c5, %c0_5] : memref<8x512xf32, #tpu.memory_space<vmem>>, vector<1x512xf32>
    %c0_6 = arith.constant 0 : index
    %c0_7 = arith.constant 0 : index
    %6 = vector.load %arg1[%c0_6, %c0_7] : memref<64x16xbf16, #tpu.memory_space<vmem>>, vector<64x16xbf16>
    %c0_8 = arith.constant 0 : index
    %c0_9 = arith.constant 0 : index
    %7 = vector.load %arg2[%c0_8, %c0_9] : memref<16x128xbf16, #tpu.memory_space<vmem>>, vector<16x128xbf16>
    %cst = arith.constant dense<0.000000e+00> : vector<64x128xf32>
    %8 = tpu.matmul %6, %7, %cst {dimension_numbers = #tpu.dot_dimension_numbers<[1], [0], [0], [1], [0, 0, 1, 1], [], []>} : vector<64x16xbf16>, vector<16x128xbf16>, vector<64x128xf32> -> vector<64x128xf32>
    %9 = vector.broadcast %0 : vector<1x128xf32> to vector<64x128xf32>
    %10 = arith.addf %8, %9 : vector<64x128xf32>
    %11 = arith.negf %10 : vector<64x128xf32>
    %12 = math.exp %11 : vector<64x128xf32>
    %cst_10 = arith.constant 1.000000e+00 : f32
    %13 = vector.broadcast %cst_10 : f32 to vector<64x128xf32>
    %14 = arith.addf %13, %12 : vector<64x128xf32>
    %15 = arith.divf %13, %14 : vector<64x128xf32>
    %16 = arith.mulf %10, %15 : vector<64x128xf32>
    %17 = arith.truncf %16 : vector<64x128xf32> to vector<64x128xbf16>
    %c0_11 = arith.constant 0 : index
    %c0_12 = arith.constant 0 : index
    %18 = vector.load %arg3[%c0_11, %c0_12] : memref<128x128xbf16, #tpu.memory_space<vmem>>, vector<128x128xbf16>
    %cst_13 = arith.constant dense<0.000000e+00> : vector<64x128xf32>
    %19 = tpu.matmul %17, %18, %cst_13 {dimension_numbers = #tpu.dot_dimension_numbers<[1], [0], [0], [1], [0, 0, 1, 1], [], []>} : vector<64x128xbf16>, vector<128x128xbf16>, vector<64x128xf32> -> vector<64x128xf32>
    %20 = vector.broadcast %1 : vector<1x128xf32> to vector<64x128xf32>
    %21 = arith.addf %19, %20 : vector<64x128xf32>
    %22 = arith.negf %21 : vector<64x128xf32>
    %23 = math.exp %22 : vector<64x128xf32>
    %cst_14 = arith.constant 1.000000e+00 : f32
    %24 = vector.broadcast %cst_14 : f32 to vector<64x128xf32>
    %25 = arith.addf %24, %23 : vector<64x128xf32>
    %26 = arith.divf %24, %25 : vector<64x128xf32>
    %27 = arith.mulf %21, %26 : vector<64x128xf32>
    %28 = arith.truncf %27 : vector<64x128xf32> to vector<64x128xbf16>
    %c0_15 = arith.constant 0 : index
    %c0_16 = arith.constant 0 : index
    %29 = vector.load %arg4[%c0_15, %c0_16] : memref<128x128xbf16, #tpu.memory_space<vmem>>, vector<128x128xbf16>
    %cst_17 = arith.constant dense<0.000000e+00> : vector<64x128xf32>
    %30 = tpu.matmul %28, %29, %cst_17 {dimension_numbers = #tpu.dot_dimension_numbers<[1], [0], [0], [1], [0, 0, 1, 1], [], []>} : vector<64x128xbf16>, vector<128x128xbf16>, vector<64x128xf32> -> vector<64x128xf32>
    %31 = vector.broadcast %2 : vector<1x128xf32> to vector<64x128xf32>
    %32 = arith.addf %30, %31 : vector<64x128xf32>
    %33 = arith.negf %32 : vector<64x128xf32>
    %34 = math.exp %33 : vector<64x128xf32>
    %cst_18 = arith.constant 1.000000e+00 : f32
    %35 = vector.broadcast %cst_18 : f32 to vector<64x128xf32>
    %36 = arith.addf %35, %34 : vector<64x128xf32>
    %37 = arith.divf %35, %36 : vector<64x128xf32>
    %38 = arith.mulf %32, %37 : vector<64x128xf32>
    %cst_19 = arith.constant dense<0.000000e+00> : vector<64xf32>
    %39 = vector.multi_reduction <add>, %38, %cst_19 [1] : vector<64x128xf32> to vector<64xf32>
    %40 = vector.shape_cast %39 : vector<64xf32> to vector<64x1xf32>
    %cst_20 = arith.constant 3.125000e-02 : f32
    %41 = vector.broadcast %cst_20 : f32 to vector<64x1xf32>
    %42 = arith.mulf %40, %41 : vector<64x1xf32>
    %43 = vector.broadcast %42 : vector<64x1xf32> to vector<64x128xf32>
    %44 = arith.subf %38, %43 : vector<64x128xf32>
    %45 = tpu.iota {dimensions = array<i32: 1>} : vector<1x128xi32>
    %c32_i32 = arith.constant 32 : i32
    %46 = vector.broadcast %c32_i32 : i32 to vector<1x128xi32>
    %47 = arith.cmpi slt, %45, %46 : vector<1x128xi32>
    %48 = arith.extui %47 : vector<1x128xi1> to vector<1x128xi32>
    %49 = arith.sitofp %48 : vector<1x128xi32> to vector<1x128xf32>
    %50 = arith.mulf %44, %44 : vector<64x128xf32>
    %51 = vector.broadcast %49 : vector<1x128xf32> to vector<64x128xf32>
    %52 = arith.mulf %50, %51 : vector<64x128xf32>
    %cst_21 = arith.constant dense<0.000000e+00> : vector<64xf32>
    %53 = vector.multi_reduction <add>, %52, %cst_21 [1] : vector<64x128xf32> to vector<64xf32>
    %54 = vector.shape_cast %53 : vector<64xf32> to vector<64x1xf32>
    %cst_22 = arith.constant 3.125000e-02 : f32
    %55 = vector.broadcast %cst_22 : f32 to vector<64x1xf32>
    %56 = arith.mulf %54, %55 : vector<64x1xf32>
    %cst_23 = arith.constant 9.99999974E-6 : f32
    %57 = vector.broadcast %cst_23 : f32 to vector<64x1xf32>
    %58 = arith.addf %56, %57 : vector<64x1xf32>
    %59 = math.rsqrt %58 : vector<64x1xf32>
    %60 = vector.broadcast %59 : vector<64x1xf32> to vector<64x128xf32>
    %61 = arith.mulf %44, %60 : vector<64x128xf32>
    %62 = vector.broadcast %3 : vector<1x128xf32> to vector<64x128xf32>
    %63 = arith.mulf %61, %62 : vector<64x128xf32>
    %64 = vector.broadcast %4 : vector<1x128xf32> to vector<64x128xf32>
    %65 = arith.addf %63, %64 : vector<64x128xf32>
    %66 = arith.truncf %65 : vector<64x128xf32> to vector<64x128xbf16>
    %c0_24 = arith.constant 0 : index
    %c0_25 = arith.constant 0 : index
    %67 = vector.load %arg5[%c0_24, %c0_25] : memref<128x512xbf16, #tpu.memory_space<vmem>>, vector<128x512xbf16>
    %cst_26 = arith.constant dense<0.000000e+00> : vector<64x512xf32>
    %68 = tpu.matmul %66, %67, %cst_26 {dimension_numbers = #tpu.dot_dimension_numbers<[1], [0], [0], [1], [0, 0, 1, 1], [], []>} : vector<64x128xbf16>, vector<128x512xbf16>, vector<64x512xf32> -> vector<64x512xf32>
    %69 = vector.broadcast %5 : vector<1x512xf32> to vector<64x512xf32>
    %70 = arith.addf %68, %69 : vector<64x512xf32>
    %71 = arith.truncf %70 : vector<64x512xf32> to vector<64x512xbf16>
    %c0_27 = arith.constant 0 : index
    %c0_28 = arith.constant 0 : index
    %72 = vector.load %arg7[%c0_27, %c0_28] : memref<64x512xbf16, #tpu.memory_space<vmem>>, vector<64x512xbf16>
    tpu.vector_store %arg7[%c0_27, %c0_28], %71 {strides = array<i32>} : memref<64x512xbf16, #tpu.memory_space<vmem>>, vector<64x512xbf16>,
    return
  }
  func.func @transform_0(%arg0: i32) -> (i32, i32) {
    %c0_i32 = arith.constant 0 : i32
    %c0_i32_0 = arith.constant 0 : i32
    return %arg0, %c0_i32 : i32, i32
  }
  func.func @transform_1(%arg0: i32) -> (i32, i32) {
    %c0_i32 = arith.constant 0 : i32
    %c0_i32_0 = arith.constant 0 : i32
    %c0_i32_1 = arith.constant 0 : i32
    return %c0_i32, %c0_i32_0 : i32, i32
  }
  func.func @transform_2(%arg0: i32) -> (i32, i32) {
    %c0_i32 = arith.constant 0 : i32
    %c0_i32_0 = arith.constant 0 : i32
    %c0_i32_1 = arith.constant 0 : i32
    return %c0_i32, %c0_i32_0 : i32, i32
  }
  func.func @transform_3(%arg0: i32) -> (i32, i32) {
    %c0_i32 = arith.constant 0 : i32
    %c0_i32_0 = arith.constant 0 : i32
    %c0_i32_1 = arith.constant 0 : i32
    return %c0_i32, %c0_i32_0 : i32, i32
  }
  func.func @transform_4(%arg0: i32) -> (i32, i32) {
    %c0_i32 = arith.constant 0 : i32
    %c0_i32_0 = arith.constant 0 : i32
    %c0_i32_1 = arith.constant 0 : i32
    return %c0_i32, %c0_i32_0 : i32, i32
  }
  func.func @transform_5(%arg0: i32) -> (i32, i32) {
    %c0_i32 = arith.constant 0 : i32
    %c0_i32_0 = arith.constant 0 : i32
    %c0_i32_1 = arith.constant 0 : i32
    return %c0_i32, %c0_i32_0 : i32, i32
  }
  func.func @transform_6(%arg0: i32) -> (i32, i32) {
    %c0_i32 = arith.constant 0 : i32
    %c0_i32_0 = arith.constant 0 : i32
    return %arg0, %c0_i32 : i32, i32
  }
}

</mosaic_0001>

<bundles_post_ra>
// kernel: tpu_custom_call.1
= control target key start
LH: loop header
LB: loop body
LE: loop exit
PB: predicated region body
PF: predicated region fallthrough
CT: control target
= control target key end

     0   :  { %11 = vsyncpa [#allocation3], 0  ;;  %s1896_s0 = inlined_call_operand.vmem [shape: bf16[64,16], index: 0, kind: input, shape index: {}]   ;;  %s1897_s1 = inlined_call_operand.vmem [shape: bf16[16,128], index: 1, kind: input, shape index: {}]   ;;  %s1898_s2 = inlined_call_operand.hbm [shape: bf16[128,128], index: 2, kind: input, shape index: {}]   ;;  %s1899_s3 = inlined_call_operand.hbm [shape: bf16[128,128], index: 3, kind: input, shape index: {}]   ;;  %s1900_s4 = inlined_call_operand.hbm [shape: bf16[128,512], index: 4, kind: input, shape index: {}]   ;;  %s1901_s5 = inlined_call_operand.vmem [shape: f32[8,512], index: 5, kind: input, shape index: {}]   ;;  %s1902_s6 = inlined_call_operand.hbm [shape: bf16[64,512], index: 6, kind: output, shape index: {}]  }
   0x1   :  { %12 = vsyncpa [#allocation6], 0 }
   0x2   :  { %13 = vsyncpa [#allocation4], 0  ;;  %s1710_s21 = smov [#allocation5]   ;;  %s1711_s23 = smov [#allocation2]  }
   0x3   :  { %s35_s22 = sshll.u32 %s1710_s21, 4  ;;  %s23_s24 = sshll.u32 %s1711_s23, 4  ;;  %s36_s22 = int_to_ptr.vmem [resolvable:$true] %s35_s22  ;;  %s24_s24 = int_to_ptr.vmem [resolvable:$true] %s23_s24 }
   0x4   :  { %s1632_s25 = scalar_lea.vmem %s36_s22, 1024  ;;  %p1637_p1 = scmp.lt.s32.totalorder %s36_s22, %s36_s22 }
   0x5   :  { %p1633_p0 = scmp.ne.s32.totalorder %s36_s22, %s1632_s25  ;;  %p1638_p2 = scmp.lt.s32.totalorder %s1632_s25, %s1632_s25 }
   0x7   :  { %p1639_p3 = por %p1638_p2, %p1637_p1 }
   0x9   :  { %p1640_p4 = pnand %p1639_p3, %p1633_p0 }
   0xb   :  { %1643 = shalt.err (!%p1640_p4)
}
   0xc   :  { %s1712_s26 = smov 64   ;;  %s1713_s27 = smov 4  }
   0xd   :  { %41 = dma.hbm_to_vmem [thread:$0]  %s1899_s3, 1024, %s36_s22, [#allocation6], %s1712_s26, %s1712_s26, %s1713_s27  }
   0xe   :  { %s1652_s30 = scalar_lea.vmem %s24_s24, 1024  ;;  %p1657_p6 = scmp.lt.s32.totalorder %s24_s24, %s24_s24 }
   0xf   :  { %p1653_p5 = scmp.ne.s32.totalorder %s24_s24, %s1652_s30  ;;  %p1658_p7 = scmp.lt.s32.totalorder %s1652_s30, %s1652_s30 }
  0x11   :  { %p1659_p8 = por %p1658_p7, %p1657_p6 }
  0x13   :  { %p1660_p9 = pnand %p1659_p8, %p1653_p5 }
  0x15   :  { %1663 = shalt.err (!%p1660_p9)
}
  0x16   :  { %29 = dma.hbm_to_vmem [thread:$0]  %s1898_s2, 1024, %s24_s24, [#allocation3], %s1712_s26, %s1712_s26, %s1713_s27  }
  0x17   :  { %s1714_s9 = smov [#allocation7]  }
  0x18   :  { %s47_s10 = sshll.u32 %s1714_s9, 4  ;;  %s48_s10 = int_to_ptr.vmem [resolvable:$true] %s47_s10 }
  0x19   :  { %s1672_s11 = scalar_lea.vmem %s48_s10, 4096  ;;  %p1677_p11 = scmp.lt.s32.totalorder %s48_s10, %s48_s10 }
  0x1a   :  { %p1673_p10 = scmp.ne.s32.totalorder %s48_s10, %s1672_s11  ;;  %p1678_p12 = scmp.lt.s32.totalorder %s1672_s11, %s1672_s11 }
  0x1c   :  { %p1679_p13 = por %p1678_p12, %p1677_p11 }
  0x1e   :  { %p1680_p0 = pnand %p1679_p13, %p1673_p10 }
  0x20   :  { %1683 = shalt.err (!%p1680_p0)
}
  0x21   :  { %s1715_s3 = smov 256   ;;  %s1716_s12 = smov 16  }
  0x22   :  { %53 = dma.hbm_to_vmem [thread:$0]  %s1900_s4, 4096, %s48_s10, [#allocation6], %s1715_s3, %s1715_s3, %s1716_s12  }
  0x23   :  { %1704 = dma.done.wait [#allocation3], 1024  }
  0x24   :  { %1705 = vsyncadd [#allocation3], 4294966272 }
  0x25   :  { %1706 = dma.done.wait [#allocation6], 5120  }
  0x26   :  { %1707 = vsyncadd [#allocation6], 4294962176  ;;  %v1443_v0 = vld [vmem:[%s1897_s1] sm:$0xff]   ;;  %vm109_vm0 = vcmask 130048   ;;  %v1445_v2 = vld [vmem:[%s1896_s0 + $0x8] sm:$0xff]  }
  0x27   :  { %v1444_v1 = vld [vmem:[%s1896_s0] sm:$0xff]   ;;  %1375 = vmatprep.subr.bf16.mxu0 %v1443_v0  ;;  %v1446_v3 = vld [vmem:[%s1896_s0 + $0x10] sm:$0xff]   ;;  %v1447_v4 = vld [vmem:[%s1896_s0 + $0x18] sm:$0xff]  }
  0x28   :  { %1376 = vmatpush3.bf16.msra.mxu0 %v1443_v0  ;;  %1377 = vmatprep.mubr.msk.bf16.mxu0 %vm109_vm0, %v1444_v1  ;;  %v1448_v5 = vld [vmem:[#allocation2 + $0x38] sm:$0xff]   ;;  %v1449_v6 = vld [vmem:[#allocation2 + $0x30] sm:$0xff]   ;;  %v1450_v7 = vld [vmem:[#allocation2 + $0x28] sm:$0xff]  }
  0x29   :  { %1385 = vmatprep.subr.bf16.mxu1 %v1448_v5  ;;  %v1451_v8 = vld [vmem:[#allocation2 + $0x20] sm:$0xff]   ;;  %v1452_v9 = vld [vmem:[#allocation2 + $0x18] sm:$0xff]   ;;  %v1453_v10 = vld [vmem:[#allocation2 + $0x10] sm:$0xff]  }
  0x2a   :  { %1386 = vmatpush3.bf16.msra.mxu1 %v1448_v5  ;;  %v1454_v11 = vld [vmem:[#allocation2 + $0x8] sm:$0xff]   ;;  %v1455_v12 = vld [vmem:[#allocation2] sm:$0xff]  }
  0x2b   :  { %1378 = vmatmul.mubr.msk.bf16.vlgmr.msra.gmra.mxu0 %vm109_vm0, %v1445_v2  ;;  %1387 = vmatprep.subr.bf16.mxu1 %v1449_v6  ;;  %v66_v13 = vld [vmem:[%s1901_s5] ss:$0 sm:$0xff] }
  0x2c   :  { %1381 = vmatprep.mubr.msk.bf16.mxu0 %vm109_vm0, %v1446_v3 }
  0x2e   :  { %1388 = vmatpush3.bf16.msra.mxu1 %v1449_v6 }
  0x2f   :  { %1389 = vmatprep.subr.bf16.mxu1 %v1450_v7 }
  0x32   :  { %1390 = vmatpush3.bf16.msra.mxu1 %v1450_v7 }
  0x33   :  { %1382 = vmatmul.mubr.msk.bf16.gmra.mxu0 %vm109_vm0, %v1447_v4  ;;  %1391 = vmatprep.subr.bf16.mxu1 %v1451_v8 }
  0x36   :  { %1392 = vmatpush3.bf16.msra.mxu1 %v1451_v8 }
  0x37   :  { %1393 = vmatprep.subr.bf16.mxu1 %v1452_v9 }
  0x3a   :  { %1394 = vmatpush3.bf16.msra.mxu1 %v1452_v9 }
  0x3b   :  { %1395 = vmatprep.subr.bf16.mxu1 %v1453_v10 }
  0x3e   :  { %1396 = vmatpush3.bf16.msra.mxu1 %v1453_v10  ;;  %v1456_v10 = vld [vmem:[#allocation5 + $0x38] sm:$0xff]  }
  0x3f   :  { %1397 = vmatprep.subr.bf16.mxu1 %v1454_v11  ;;  %1409 = vmatprep.subr.bf16.mxu0 %v1456_v10 }
  0x40   :  { %1410 = vmatpush3.bf16.msra.mxu0 %v1456_v10 }
  0x42   :  { %1398 = vmatpush3.bf16.msra.mxu1 %v1454_v11  ;;  %v1457_v11 = vld [vmem:[#allocation5 + $0x30] sm:$0xff]  }
  0x43   :  { %1399 = vmatprep.subr.bf16.mxu1 %v1455_v12  ;;  %1411 = vmatprep.subr.bf16.mxu0 %v1457_v11 }
  0x44   :  { %1412 = vmatpush3.bf16.msra.mxu0 %v1457_v11 }
  0x46   :  { %1400 = vmatpush3.bf16.msra.mxu1 %v1455_v12  ;;  %v1458_v12 = vld [vmem:[#allocation5 + $0x28] sm:$0xff]  }
  0x47   :  { %1413 = vmatprep.subr.bf16.mxu0 %v1458_v12 }
  0x48   :  { %1414 = vmatpush3.bf16.msra.mxu0 %v1458_v12 }
  0xeb   :  { %v1379_v14 = vpop.f32.mrf.mxu0 }
  0xec   :  { %v165_v15 = vadd.f32 %v1379_v14, %v66_v13  ;;  %v1460_v14 = vld [vmem:[#allocation5 + $0x18] sm:$0xff]  }
  0xed   :  { %v156_v16 = vpop.f32.mrf.mxu0 }
  0xee   :  { %v1243_v17 = vmul.f32 -1.442695, %v165_v15  ;;  %v157_v18 = vadd.f32 %v156_v16, %v66_v13  ;;  %v1462_v16 = vld [vmem:[#allocation5 + $0x8] sm:$0xff]  }
  0xef   :  { %v1380_v19 = vpop.f32.mrf.mxu0 }
  0xf0   :  { %v1241_v20 = vmul.f32 -1.442695, %v157_v18  ;;  %v168_v21 = vadd.f32 %v1380_v19, %v66_v13  ;;  %1512 = vpow2.f32 %v1243_v17  ;;  %v1463_v17 = vld [vmem:[#allocation5] sm:$0xff]  }
  0xf1   :  { %v159_v22 = vpop.f32.mrf.mxu0 }
  0xf2   :  { %1514 = vpow2.f32 %v1241_v20  ;;  %v1244_v23 = vmul.f32 -1.442695, %v168_v21  ;;  %v160_v24 = vadd.f32 %v159_v22, %v66_v13 }
  0xf3   :  { %v1383_v25 = vpop.f32.mrf.mxu0 }
  0xf4   :  { %1516 = vpow2.f32 %v1244_v23  ;;  %v1242_v26 = vmul.f32 -1.442695, %v160_v24  ;;  %v181_v27 = vadd.f32 %v1383_v25, %v66_v13 }
  0xf5   :  { %v172_v28 = vpop.f32.mrf.mxu0 }
  0xf6   :  { %1518 = vpow2.f32 %v1242_v26  ;;  %v1247_v29 = vmul.f32 -1.442695, %v181_v27  ;;  %v173_v30 = vadd.f32 %v172_v28, %v66_v13 }
  0xf7   :  { %v1384_v31 = vpop.f32.mrf.mxu0 }
  0xf8   :  { %v1245_v32 = vmul.f32 -1.442695, %v173_v30  ;;  %v184_v33 = vadd.f32 %v1384_v31, %v66_v13  ;;  %1520 = vpow2.f32 %v1247_v29 }
  0xf9   :  { %v175_v34 = vpop.f32.mrf.mxu0 }
  0xfa   :  { %1522 = vpow2.f32 %v1245_v32  ;;  %v1248_v35 = vmul.f32 -1.442695, %v184_v33  ;;  %v176_v36 = vadd.f32 %v175_v34, %v66_v13  ;;  %v1459_v13 = vld [vmem:[#allocation5 + $0x20] sm:$0xff]  }
  0xfb   :  { %1415 = vmatprep.subr.bf16.mxu0 %v1459_v13 }
  0xfc   :  { %1524 = vpow2.f32 %v1248_v35  ;;  %v1246_v37 = vmul.f32 -1.442695, %v176_v36  ;;  %1416 = vmatpush3.bf16.msra.mxu0 %v1459_v13 }
  0xfd   :  { %v1513_v38 = vpop.eup %1512  ;;  %1417 = vmatprep.subr.bf16.mxu0 %v1460_v14 }
  0xfe   :  { %1526 = vpow2.f32 %v1246_v37  ;;  %v213_v42 = vadd.f32 1.0, %v1513_v38 }
  0xff   :  { %v1515_v39 = vpop.eup %1514 }
 0x100   :  { %v211_v40 = vadd.f32 1.0, %v1515_v39  ;;  %1418 = vmatpush3.bf16.msra.mxu0 %v1460_v14 }
 0x101   :  { %v1517_v41 = vpop.eup %1516 }
 0x102   :  { %v214_v43 = vadd.f32 1.0, %v1517_v41  ;;  %1528 = vrcp.f32 %v211_v40 }
 0x103   :  { %v1519_v44 = vpop.eup %1518 }
 0x104   :  { %1530 = vrcp.f32 %v214_v43  ;;  %v212_v45 = vadd.f32 1.0, %v1519_v44 }
 0x105   :  { %1532 = vrcp.f32 %v213_v42  ;;  %v1521_v46 = vpop.eup %1520 }
 0x106   :  { %1534 = vrcp.f32 %v212_v45  ;;  %v217_v50 = vadd.f32 1.0, %v1521_v46 }
 0x107   :  { %v1523_v47 = vpop.eup %1522 }
 0x108   :  { %v215_v48 = vadd.f32 1.0, %v1523_v47 }
 0x109   :  { %v1525_v49 = vpop.eup %1524 }
 0x10a   :  { %v218_v51 = vadd.f32 1.0, %v1525_v49  ;;  %1536 = vrcp.f32 %v215_v48 }
 0x10b   :  { %v1527_v52 = vpop.eup %1526 }
 0x10c   :  { %1538 = vrcp.f32 %v218_v51  ;;  %v216_v53 = vadd.f32 1.0, %v1527_v52 }
 0x10d   :  { %1540 = vrcp.f32 %v217_v50 }
 0x10e   :  { %1542 = vrcp.f32 %v216_v53 }
 0x10f   :  { %v1529_v54 = vpop.eup %1528 }
 0x110   :  { %v235_v59 = vmul.f32 %v1529_v54, %v157_v18  ;;  %v67_v18 = vld [vmem:[%s1901_s5 + $0x1] ss:$0 sm:$0xff] }
 0x111   :  { %v1531_v55 = vpop.eup %1530 }
 0x112   :  { %v1533_v56 = vpop.eup %1532  ;;  %v238_v58 = vmul.f32 %v1531_v55, %v168_v21 }
 0x113   :  { %v1535_v57 = vpop.eup %1534  ;;  %v237_v61 = vmul.f32 %v1533_v56, %v165_v15  ;;  %v1461_v15 = vld [vmem:[#allocation5 + $0x10] sm:$0xff]  }
 0x114   :  { %v236_v60 = vmul.f32 %v1535_v57, %v160_v24  ;;  %1419 = vmatprep.subr.bf16.mxu0 %v1461_v15 }
 0x115   :  { %v244_v63 = vpack.c.bf16 %v238_v58, %v237_v61  ;;  %1420 = vmatpush3.bf16.msra.mxu0 %v1461_v15  ;;  %v68_v15 = vld [vmem:[%s1901_s5 + $0x2] ss:$0 sm:$0xff] }
 0x116   :  { %v243_v62 = vpack.c.bf16 %v236_v60, %v235_v59  ;;  %1421 = vmatprep.subr.bf16.mxu0 %v1462_v16 }
 0x117   :  { %v1537_v0 = vpop.eup %1536 }
 0x118   :  { %1401 = vmatprep.mubr.bf16.mxu1 %v243_v62  ;;  %v239_v5 = vmul.f32 %v1537_v0, %v173_v30 }
 0x119   :  { %v1539_v1 = vpop.eup %1538  ;;  %1402 = vmatmul.mubr.bf16.vlgmr.msra.gmra.mxu1 %v244_v63  ;;  %1422 = vmatpush3.bf16.msra.mxu0 %v1462_v16 }
 0x11a   :  { %v1541_v2 = vpop.eup %1540  ;;  %v242_v4 = vmul.f32 %v1539_v1, %v184_v33  ;;  %1423 = vmatprep.subr.bf16.mxu0 %v1463_v17 }
 0x11b   :  { %v1543_v3 = vpop.eup %1542  ;;  %v241_v7 = vmul.f32 %v1541_v2, %v181_v27 }
 0x11c   :  { %v240_v6 = vmul.f32 %v1543_v3, %v176_v36 }
 0x11d   :  { %v246_v9 = vpack.c.bf16 %v242_v4, %v241_v7  ;;  %1424 = vmatpush3.bf16.msra.mxu0 %v1463_v17 }
 0x11e   :  { %v245_v8 = vpack.c.bf16 %v240_v6, %v239_v5 }
 0x120   :  { %1405 = vmatprep.mubr.bf16.mxu1 %v245_v8 }
 0x121   :  { %1406 = vmatmul.mubr.bf16.gmra.mxu1 %v246_v9 }
 0x1d9   :  { %v1403_v19 = vpop.f32.mrf.mxu1 }
 0x1da   :  { %v354_v20 = vadd.f32 %v1403_v19, %v67_v18 }
 0x1db   :  { %v345_v21 = vpop.f32.mrf.mxu1 }
 0x1dc   :  { %v1259_v22 = vmul.f32 -1.442695, %v354_v20  ;;  %v346_v23 = vadd.f32 %v345_v21, %v67_v18 }
 0x1dd   :  { %v1404_v24 = vpop.f32.mrf.mxu1 }
 0x1de   :  { %v1257_v25 = vmul.f32 -1.442695, %v346_v23  ;;  %v357_v26 = vadd.f32 %v1404_v24, %v67_v18  ;;  %1544 = vpow2.f32 %v1259_v22 }
 0x1df   :  { %v348_v27 = vpop.f32.mrf.mxu1 }
 0x1e0   :  { %1546 = vpow2.f32 %v1257_v25  ;;  %v1260_v28 = vmul.f32 -1.442695, %v357_v26  ;;  %v349_v29 = vadd.f32 %v348_v27, %v67_v18 }
 0x1e1   :  { %v1407_v30 = vpop.f32.mrf.mxu1 }
 0x1e2   :  { %1548 = vpow2.f32 %v1260_v28  ;;  %v1258_v31 = vmul.f32 -1.442695, %v349_v29  ;;  %v370_v32 = vadd.f32 %v1407_v30, %v67_v18 }
 0x1e3   :  { %v361_v33 = vpop.f32.mrf.mxu1 }
 0x1e4   :  { %1550 = vpow2.f32 %v1258_v31  ;;  %v1263_v34 = vmul.f32 -1.442695, %v370_v32  ;;  %v362_v35 = vadd.f32 %v361_v33, %v67_v18 }
 0x1e5   :  { %v1408_v36 = vpop.f32.mrf.mxu1 }
 0x1e6   :  { %v1261_v37 = vmul.f32 -1.442695, %v362_v35  ;;  %v373_v38 = vadd.f32 %v1408_v36, %v67_v18  ;;  %1552 = vpow2.f32 %v1263_v34 }
 0x1e7   :  { %v364_v39 = vpop.f32.mrf.mxu1 }
 0x1e8   :  { %1554 = vpow2.f32 %v1261_v37  ;;  %v1264_v40 = vmul.f32 -1.442695, %v373_v38  ;;  %v365_v41 = vadd.f32 %v364_v39, %v67_v18 }
 0x1ea   :  { %1556 = vpow2.f32 %v1264_v40  ;;  %v1262_v42 = vmul.f32 -1.442695, %v365_v41 }
 0x1eb   :  { %v1545_v43 = vpop.eup %1544 }
 0x1ec   :  { %1558 = vpow2.f32 %v1262_v42  ;;  %v402_v47 = vadd.f32 1.0, %v1545_v43 }
 0x1ed   :  { %v1547_v44 = vpop.eup %1546 }
 0x1ee   :  { %v400_v45 = vadd.f32 1.0, %v1547_v44 }
 0x1ef   :  { %v1549_v46 = vpop.eup %1548 }
 0x1f0   :  { %v403_v48 = vadd.f32 1.0, %v1549_v46  ;;  %1560 = vrcp.f32 %v400_v45 }
 0x1f1   :  { %v1551_v49 = vpop.eup %1550 }
 0x1f2   :  { %1562 = vrcp.f32 %v403_v48  ;;  %v401_v50 = vadd.f32 1.0, %v1551_v49 }
 0x1f3   :  { %1564 = vrcp.f32 %v402_v47  ;;  %v1553_v51 = vpop.eup %1552 }
 0x1f4   :  { %1566 = vrcp.f32 %v401_v50  ;;  %v406_v55 = vadd.f32 1.0, %v1553_v51 }
 0x1f5   :  { %v1555_v52 = vpop.eup %1554 }
 0x1f6   :  { %v404_v53 = vadd.f32 1.0, %v1555_v52 }
 0x1f7   :  { %v1557_v54 = vpop.eup %1556 }
 0x1f8   :  { %v407_v56 = vadd.f32 1.0, %v1557_v54  ;;  %1568 = vrcp.f32 %v404_v53 }
 0x1f9   :  { %v1559_v57 = vpop.eup %1558 }
 0x1fa   :  { %1570 = vrcp.f32 %v407_v56  ;;  %v405_v58 = vadd.f32 1.0, %v1559_v57 }
 0x1fb   :  { %1572 = vrcp.f32 %v406_v55 }
 0x1fc   :  { %1574 = vrcp.f32 %v405_v58 }
 0x1fd   :  { %v1561_v59 = vpop.eup %1560 }
 0x1fe   :  { %v424_v0 = vmul.f32 %v1561_v59, %v346_v23 }
 0x1ff   :  { %v1563_v60 = vpop.eup %1562 }
 0x200   :  { %v1565_v61 = vpop.eup %1564  ;;  %v427_v63 = vmul.f32 %v1563_v60, %v357_v26 }
 0x201   :  { %v1567_v62 = vpop.eup %1566  ;;  %v426_v2 = vmul.f32 %v1565_v61, %v354_v20 }
 0x202   :  { %v425_v1 = vmul.f32 %v1567_v62, %v349_v29 }
 0x203   :  { %v433_v4 = vpack.c.bf16 %v427_v63, %v426_v2 }
 0x204   :  { %v432_v3 = vpack.c.bf16 %v425_v1, %v424_v0 }
 0x205   :  { %v1569_v5 = vpop.eup %1568 }
 0x206   :  { %1425 = vmatprep.mubr.bf16.mxu0 %v432_v3  ;;  %v428_v10 = vmul.f32 %v1569_v5, %v362_v35 }
 0x207   :  { %v1571_v6 = vpop.eup %1570  ;;  %1426 = vmatmul.mubr.bf16.vlgmr.msra.gmra.mxu0 %v433_v4 }
 0x208   :  { %v1573_v7 = vpop.eup %1572  ;;  %v431_v9 = vmul.f32 %v1571_v6, %v373_v38 }
 0x209   :  { %v1575_v8 = vpop.eup %1574  ;;  %v430_v12 = vmul.f32 %v1573_v7, %v370_v32 }
 0x20a   :  { %v429_v11 = vmul.f32 %v1575_v8, %v365_v41  ;;  %v1464_v8 = vld [vmem:[#allocation7 + $0xe0] ss:$16 sps:$4 sm:$0xff]  }
 0x20b   :  { %v435_v14 = vpack.c.bf16 %v431_v9, %v430_v12  ;;  %v1466_v9 = vld [vmem:[#allocation7 + $0xe4] ss:$16 sps:$4 sm:$0xff]   ;;  %v653_v12 = vlaneseq }
 0x20c   :  { %v434_v13 = vpack.c.bf16 %v429_v11, %v428_v10  ;;  %v1467_v10 = vld [vmem:[#allocation7 + $0xe8] ss:$16 sps:$4 sm:$0xff]   ;;  %v1469_v11 = vld [vmem:[#allocation7 + $0xec] ss:$16 sps:$4 sm:$0xff]   ;;  %955 = vmatprep.subr.bf16.mxu1 %v1466_v9 }
 0x20d   :  { %1028 = vmatprep.subr.bf16.mxu0 %v1469_v11  ;;  %956 = vmatpush1.bf16.msra.mxu1 %v1464_v8  ;;  %v1496_v8 = vld [vmem:[#allocation7 + $0x44] ss:$16 sps:$4 sm:$0xff]   ;;  %v1499_v9 = vld [vmem:[#allocation7 + $0x4c] ss:$16 sps:$4 sm:$0xff]   ;;  %v1497_v11 = vld [vmem:[#allocation7 + $0x48] ss:$16 sps:$4 sm:$0xff]  }
 0x20e   :  { %1429 = vmatprep.mubr.bf16.mxu0 %v434_v13  ;;  %1029 = vmatpush1.bf16.msra.mxu0 %v1467_v10  ;;  %v1494_v10 = vld [vmem:[#allocation7 + $0x40] ss:$16 sps:$4 sm:$0xff]  }
 0x20f   :  { %1430 = vmatmul.mubr.bf16.gmra.mxu0 %v435_v14  ;;  %v654_v14 = vand.u32 127, %v653_v12 }
 0x211   :  { %vm655_vm1 = vcmp.lt.s32.totalorder %v654_v14, 32  ;;  %v1505_v14 = vld [vmem:[#allocation7 + $0x2c] ss:$16 sps:$4 sm:$0xff]  }
 0x2c7   :  { %v1427_v16 = vpop.f32.mrf.mxu0 }
 0x2c8   :  { %v543_v17 = vadd.f32 %v1427_v16, %v68_v15 }
 0x2c9   :  { %v534_v18 = vpop.f32.mrf.mxu0 }
 0x2ca   :  { %v1275_v19 = vmul.f32 -1.442695, %v543_v17  ;;  %v535_v20 = vadd.f32 %v534_v18, %v68_v15 }
 0x2cb   :  { %v1428_v21 = vpop.f32.mrf.mxu0 }
 0x2cc   :  { %1576 = vpow2.f32 %v1275_v19  ;;  %v1273_v22 = vmul.f32 -1.442695, %v535_v20  ;;  %v546_v23 = vadd.f32 %v1428_v21, %v68_v15 }
 0x2cd   :  { %v537_v24 = vpop.f32.mrf.mxu0 }
 0x2ce   :  { %1578 = vpow2.f32 %v1273_v22  ;;  %v1276_v25 = vmul.f32 -1.442695, %v546_v23  ;;  %v538_v26 = vadd.f32 %v537_v24, %v68_v15 }
 0x2cf   :  { %v1431_v27 = vpop.f32.mrf.mxu0 }
 0x2d0   :  { %1580 = vpow2.f32 %v1276_v25  ;;  %v1274_v28 = vmul.f32 -1.442695, %v538_v26  ;;  %v559_v29 = vadd.f32 %v1431_v27, %v68_v15  ;;  %v1717_v25 = vmov 0.0  }
 0x2d1   :  { %v550_v30 = vpop.f32.mrf.mxu0 }
 0x2d2   :  { %1582 = vpow2.f32 %v1274_v28  ;;  %v1279_v31 = vmul.f32 -1.442695, %v559_v29  ;;  %v551_v32 = vadd.f32 %v550_v30, %v68_v15 }
 0x2d3   :  { %v1432_v33 = vpop.f32.mrf.mxu0 }
 0x2d4   :  { %1584 = vpow2.f32 %v1279_v31  ;;  %v1277_v34 = vmul.f32 -1.442695, %v551_v32  ;;  %v562_v35 = vadd.f32 %v1432_v33, %v68_v15 }
 0x2d5   :  { %v553_v36 = vpop.f32.mrf.mxu0 }
 0x2d6   :  { %1586 = vpow2.f32 %v1277_v34  ;;  %v1280_v37 = vmul.f32 -1.442695, %v562_v35  ;;  %v554_v38 = vadd.f32 %v553_v36, %v68_v15 }
 0x2d8   :  { %1588 = vpow2.f32 %v1280_v37  ;;  %v1278_v39 = vmul.f32 -1.442695, %v554_v38 }
 0x2d9   :  { %v1577_v40 = vpop.eup %1576 }
 0x2da   :  { %v591_v41 = vadd.f32 1.0, %v1577_v40  ;;  %1590 = vpow2.f32 %v1278_v39 }
 0x2db   :  { %v1579_v42 = vpop.eup %1578 }
 0x2dc   :  { %1592 = vrcp.f32 %v591_v41  ;;  %v589_v43 = vadd.f32 1.0, %v1579_v42 }
 0x2dd   :  { %v1581_v44 = vpop.eup %1580 }
 0x2de   :  { %1594 = vrcp.f32 %v589_v43  ;;  %v592_v45 = vadd.f32 1.0, %v1581_v44 }
 0x2df   :  { %v1583_v46 = vpop.eup %1582 }
 0x2e0   :  { %1596 = vrcp.f32 %v592_v45  ;;  %v590_v47 = vadd.f32 1.0, %v1583_v46 }
 0x2e1   :  { %v1585_v48 = vpop.eup %1584 }
 0x2e2   :  { %1598 = vrcp.f32 %v590_v47  ;;  %v595_v50 = vadd.f32 1.0, %v1585_v48 }
 0x2e3   :  { %v1587_v49 = vpop.eup %1586 }
 0x2e4   :  { %v593_v51 = vadd.f32 1.0, %v1587_v49 }
 0x2e5   :  { %v1589_v52 = vpop.eup %1588 }
 0x2e6   :  { %1600 = vrcp.f32 %v593_v51  ;;  %v596_v54 = vadd.f32 1.0, %v1589_v52 }
 0x2e7   :  { %v1591_v53 = vpop.eup %1590  ;;  %1602 = vrcp.f32 %v595_v50 }
 0x2e8   :  { %v594_v55 = vadd.f32 1.0, %v1591_v53 }
 0x2e9   :  { %v1593_v56 = vpop.eup %1592 }
 0x2ea   :  { %1604 = vrcp.f32 %v594_v55  ;;  %v615_v57 = vmul.f32 %v1593_v56, %v543_v17  ;;  %v1475_v55 = vld [vmem:[#allocation7 + $0xcc] ss:$16 sps:$4 sm:$0xff]   ;;  %v1470_v56 = vld [vmem:[#allocation7 + $0xc0] ss:$16 sps:$4 sm:$0xff]  }
 0x2eb   :  { %v1595_v58 = vpop.eup %1594  ;;  %1606 = vrcp.f32 %v596_v54  ;;  %v1472_v54 = vld [vmem:[#allocation7 + $0xc4] ss:$16 sps:$4 sm:$0xff]   ;;  %1030 = vmatprep.subr.bf16.mxu0 %v1475_v55 }
 0x2ec   :  { %625 = vadd.xlane.f32.xlu1 %v615_v57  ;;  %v613_v59 = vmul.f32 %v1595_v58, %v535_v20  ;;  %957 = vmatprep.subr.bf16.mxu1 %v1472_v54  ;;  %v69_v54 = vld [vmem:[%s1901_s5 + $0x3] ss:$0 sm:$0xff] }
 0x2ed   :  { %v1597_v60 = vpop.eup %1596  ;;  %958 = vmatpush1.bf16.msra.mxu1 %v1470_v56 }
 0x2ee   :  { %621 = vadd.xlane.f32.xlu0 %v613_v59  ;;  %v616_v61 = vmul.f32 %v1597_v60, %v546_v23  ;;  %v1478_v60 = vld [vmem:[#allocation7 + $0xa4] ss:$16 sps:$4 sm:$0xff]  }
 0x2ef   :  { %v1599_v62 = vpop.eup %1598  ;;  %959 = vmatprep.subr.bf16.mxu1 %v1478_v60 }
 0x2f0   :  { %627 = vadd.xlane.f32.xlu1 %v616_v61  ;;  %v614_v63 = vmul.f32 %v1599_v62, %v538_v26  ;;  %v1281_v26 = vsel %vm655_vm1, 1.0, %v1717_v25  ;;  %v1476_v62 = vld [vmem:[#allocation7 + $0xa0] ss:$16 sps:$4 sm:$0xff]  }
 0x2f1   :  { %960 = vmatpush1.bf16.msra.mxu1 %v1476_v62 }
 0x2f2   :  { %623 = vadd.xlane.f32.xlu0 %v614_v63 }
 0x2f3   :  { %v1601_v0 = vpop.eup %1600 }
 0x2f4   :  { %v617_v1 = vmul.f32 %v1601_v0, %v551_v32  ;;  %v1603_v2 = vpop.eup %1602  ;;  %v1484_v0 = vld [vmem:[#allocation7 + $0x84] ss:$16 sps:$4 sm:$0xff]  }
 0x2f5   :  { %v619_v5 = vmul.f32 %v1603_v2, %v559_v29  ;;  %v1482_v2 = vld [vmem:[#allocation7 + $0x80] ss:$16 sps:$4 sm:$0xff]   ;;  %961 = vmatprep.subr.bf16.mxu1 %v1484_v0 }
 0x2f6   :  { %629 = vadd.xlane.f32.xlu0 %v617_v1  ;;  %962 = vmatpush1.bf16.msra.mxu1 %v1482_v2 }
 0x2f7   :  { %v1605_v3 = vpop.eup %1604 }
 0x2f8   :  { %v618_v4 = vmul.f32 %v1605_v3, %v554_v38  ;;  %v1607_v6 = vpop.eup %1606  ;;  %v1485_v3 = vld [vmem:[#allocation7 + $0x88] ss:$16 sps:$4 sm:$0xff]  }
 0x2f9   :  { %v620_v7 = vmul.f32 %v1607_v6, %v562_v35  ;;  %v1488_v6 = vld [vmem:[#allocation7 + $0x60] ss:$16 sps:$4 sm:$0xff]  }
 0x2fa   :  { %631 = vadd.xlane.f32.xlu1 %v618_v4  ;;  %633 = vadd.xlane.f32.xlu0 %v619_v5 }
 0x2fe   :  { %635 = vadd.xlane.f32.xlu1 %v620_v7 }
 0x375   :  { %v626_v13 = vpop.xlane.xlu1 %625 }
 0x376   :  { %v639_v15 = vmul.f32 0.03125, %v626_v13  ;;  %v1502_v13 = vld [vmem:[#allocation7 + $0x24] ss:$16 sps:$4 sm:$0xff]  }
 0x377   :  { %v622_v16 = vpop.xlane.xlu0 %621 }
 0x378   :  { %v637_v17 = vmul.f32 0.03125, %v622_v16  ;;  %v1792_v19 = vsub.f32 %v615_v57, %v639_v15  ;;  %v1473_v57 = vld [vmem:[#allocation7 + $0xc8] ss:$16 sps:$4 sm:$0xff]   ;;  %v1500_v15 = vld [vmem:[#allocation7 + $0x20] ss:$16 sps:$4 sm:$0xff]  }
 0x379   :  { %v628_v18 = vpop.xlane.xlu1 %627  ;;  %1031 = vmatpush1.bf16.msra.mxu0 %v1473_v57  ;;  %v1503_v16 = vld [vmem:[#allocation7 + $0x28] ss:$16 sps:$4 sm:$0xff]  }
 0x37a   :  { %v1794_v20 = vsub.f32 %v613_v59, %v637_v17  ;;  %v640_v21 = vmul.f32 0.03125, %v628_v18  ;;  %v660_v30 = vmul.f32 %v1792_v19, %v1792_v19  ;;  %v1508_v17 = vld [vmem:[#allocation7 + $0x4] ss:$16 sps:$4 sm:$0xff]   ;;  %v1511_v18 = vld [vmem:[#allocation7 + $0xc] ss:$16 sps:$4 sm:$0xff]  }
 0x37b   :  { %v624_v22 = vpop.xlane.xlu0 %623 }
 0x37c   :  { %v638_v23 = vmul.f32 0.03125, %v624_v22  ;;  %v658_v24 = vmul.f32 %v1794_v20, %v1794_v20  ;;  %v1798_v27 = vsub.f32 %v616_v61, %v640_v21  ;;  %v668_v35 = vmul.f32 %v1281_v26, %v660_v30  ;;  %v1481_v61 = vld [vmem:[#allocation7 + $0xac] ss:$16 sps:$4 sm:$0xff]   ;;  %v1506_v21 = vld [vmem:[#allocation7] ss:$16 sps:$4 sm:$0xff]  }
 0x37d   :  { %1032 = vmatprep.subr.bf16.mxu0 %v1481_v61  ;;  %v1509_v22 = vld [vmem:[#allocation7 + $0x8] ss:$16 sps:$4 sm:$0xff]   ;;  %v70_v61 = vld [vmem:[%s1901_s5 + $0x4] ss:$0 sm:$0xff] }
 0x37e   :  { %v1800_v28 = vsub.f32 %v614_v63, %v638_v23  ;;  %v666_v29 = vmul.f32 %v1281_v26, %v658_v24  ;;  %v661_v37 = vmul.f32 %v1798_v27, %v1798_v27  ;;  %v1479_v63 = vld [vmem:[#allocation7 + $0xa8] ss:$16 sps:$4 sm:$0xff]   ;;  %v1718_v23 = vmov 0  }
 0x37f   :  { %v630_v31 = vpop.xlane.xlu0 %629  ;;  %1033 = vmatpush1.bf16.msra.mxu0 %v1479_v63  ;;  %987 = vmatprep.mubr.bf16.mxu1 %v1718_v23 }
 0x380   :  { %v641_v32 = vmul.f32 0.03125, %v630_v31  ;;  %674 = vadd.xlane.f32.xlu0 %v666_v29  ;;  %v659_v33 = vmul.f32 %v1800_v28, %v1800_v28  ;;  %v669_v45 = vmul.f32 %v1281_v26, %v661_v37  ;;  %1060 = vmatprep.mubr.bf16.mxu0 %v1718_v23 }
 0x382   :  { %v1806_v34 = vsub.f32 %v617_v1, %v641_v32  ;;  %v667_v36 = vmul.f32 %v1281_v26, %v659_v33  ;;  %v1487_v1 = vld [vmem:[#allocation7 + $0x8c] ss:$16 sps:$4 sm:$0xff]  }
 0x383   :  { %v632_v38 = vpop.xlane.xlu1 %631  ;;  %v634_v39 = vpop.xlane.xlu0 %633  ;;  %1034 = vmatprep.subr.bf16.mxu0 %v1487_v1 }
 0x384   :  { %v642_v40 = vmul.f32 0.03125, %v632_v38  ;;  %v643_v41 = vmul.f32 0.03125, %v634_v39  ;;  %678 = vadd.xlane.f32.xlu0 %v668_v35  ;;  %676 = vadd.xlane.f32.xlu1 %v667_v36  ;;  %v662_v42 = vmul.f32 %v1806_v34, %v1806_v34 }
 0x385   :  { %1035 = vmatpush1.bf16.msra.mxu0 %v1485_v3 }
 0x386   :  { %v1812_v43 = vsub.f32 %v618_v4, %v642_v40  ;;  %v1814_v44 = vsub.f32 %v619_v5, %v643_v41  ;;  %v670_v46 = vmul.f32 %v1281_v26, %v662_v42  ;;  %v1490_v4 = vld [vmem:[#allocation7 + $0x64] ss:$16 sps:$4 sm:$0xff]   ;;  %v1493_v5 = vld [vmem:[#allocation7 + $0x6c] ss:$16 sps:$4 sm:$0xff]  }
 0x387   :  { %v636_v47 = vpop.xlane.xlu1 %635  ;;  %963 = vmatprep.subr.bf16.mxu1 %v1490_v4  ;;  %1036 = vmatprep.subr.bf16.mxu0 %v1493_v5 }
 0x388   :  { %v644_v48 = vmul.f32 0.03125, %v636_v47  ;;  %680 = vadd.xlane.f32.xlu1 %v669_v45  ;;  %682 = vadd.xlane.f32.xlu0 %v670_v46  ;;  %v663_v49 = vmul.f32 %v1812_v43, %v1812_v43  ;;  %v664_v50 = vmul.f32 %v1814_v44, %v1814_v44 }
 0x389   :  { %964 = vmatpush1.bf16.msra.mxu1 %v1488_v6 }
 0x38a   :  { %v1820_v51 = vsub.f32 %v620_v7, %v644_v48  ;;  %v671_v52 = vmul.f32 %v1281_v26, %v663_v49  ;;  %v672_v53 = vmul.f32 %v1281_v26, %v664_v50  ;;  %v1491_v7 = vld [vmem:[#allocation7 + $0x68] ss:$16 sps:$4 sm:$0xff]   ;;  %965 = vmatprep.subr.bf16.mxu1 %v1496_v8 }
 0x38b   :  { %1037 = vmatpush1.bf16.msra.mxu0 %v1491_v7 }
 0x38c   :  { %684 = vadd.xlane.f32.xlu1 %v671_v52  ;;  %686 = vadd.xlane.f32.xlu0 %v672_v53  ;;  %v665_v58 = vmul.f32 %v1820_v51, %v1820_v51 }
 0x38d   :  { %1038 = vmatprep.subr.bf16.mxu0 %v1499_v9  ;;  %966 = vmatpush1.bf16.msra.mxu1 %v1494_v10 }
 0x38e   :  { %v673_v59 = vmul.f32 %v1281_v26, %v665_v58  ;;  %967 = vmatprep.subr.bf16.mxu1 %v1502_v13 }
 0x38f   :  { %1039 = vmatpush1.bf16.msra.mxu0 %v1497_v11 }
 0x390   :  { %688 = vadd.xlane.f32.xlu1 %v673_v59  ;;  %1040 = vmatprep.subr.bf16.mxu0 %v1505_v14 }
 0x391   :  { %968 = vmatpush1.bf16.msra.mxu1 %v1500_v15 }
 0x392   :  { %969 = vmatprep.subr.bf16.mxu1 %v1508_v17 }
 0x393   :  { %1041 = vmatpush1.bf16.msra.mxu0 %v1503_v16 }
 0x394   :  { %1042 = vmatprep.subr.bf16.mxu0 %v1511_v18 }
 0x395   :  { %970 = vmatpush1.bf16.msra.mxu1 %v1506_v21 }
 0x397   :  { %1043 = vmatpush1.bf16.msra.mxu0 %v1509_v22 }
 0x409   :  { %v675_v24 = vpop.xlane.xlu0 %674 }
 0x40a   :  { %v690_v25 = vmul.f32 0.03125, %v675_v24 }
 0x40c   :  { %v698_v26 = vadd.f32 1e-05, %v690_v25 }
 0x40d   :  { %v677_v29 = vpop.xlane.xlu1 %676  ;;  %v679_v30 = vpop.xlane.xlu0 %678 }
 0x40e   :  { %1608 = vrsqrt.f32 %v698_v26  ;;  %v691_v31 = vmul.f32 0.03125, %v677_v29  ;;  %v692_v32 = vmul.f32 0.03125, %v679_v30  ;;  %v776_v26 = vshrl.u32 %v653_v12, 7 }
 0x410   :  { %v699_v33 = vadd.f32 1e-05, %v691_v31  ;;  %v700_v35 = vadd.f32 1e-05, %v692_v32  ;;  %v785_v29 = vsub.s32 2, %v776_v26  ;;  %v781_v30 = vsub.s32 1, %v776_v26 }
 0x411   :  { %v681_v36 = vpop.xlane.xlu1 %680  ;;  %v683_v37 = vpop.xlane.xlu0 %682  ;;  %v1231_v31 = vld [vmem:[%s1901_s5 + $0x5] ss:$8 sm:$0xf]  ;;  %s1719_s5 = smov [#allocation8]  }
 0x412   :  { %1610 = vrsqrt.f32 %v699_v33  ;;  %v693_v38 = vmul.f32 0.03125, %v681_v36  ;;  %v694_v40 = vmul.f32 0.03125, %v683_v37  ;;  %v1852_v33 = vrot.slane %v1231_v31, %v785_v29  ;;  %s1218_s9 = sshll.u32 %s1719_s5, 4  ;;  %s1219_s9 = int_to_ptr.vmem [resolvable:$true] %s1218_s9 }
 0x413   :  { %1612 = vrsqrt.f32 %v700_v35  ;;  %s1684_s10 = scalar_lea.vmem %s1219_s9, 2048  ;;  %p1689_p2 = scmp.lt.s32.totalorder %s1219_s9, %s1219_s9 }
 0x414   :  { %v701_v39 = vadd.f32 1e-05, %v693_v38  ;;  %v702_v45 = vadd.f32 1e-05, %v694_v40  ;;  %p1685_p1 = scmp.ne.s32.totalorder %s1219_s9, %s1684_s10  ;;  %p1690_p3 = scmp.lt.s32.totalorder %s1684_s10, %s1684_s10 }
 0x415   :  { %v685_v41 = vpop.xlane.xlu1 %684  ;;  %v687_v47 = vpop.xlane.xlu0 %686 }
 0x416   :  { %1614 = vrsqrt.f32 %v701_v39  ;;  %v695_v42 = vmul.f32 0.03125, %v685_v41  ;;  %v696_v52 = vmul.f32 0.03125, %v687_v47  ;;  %p1691_p4 = por %p1690_p3, %p1689_p2 }
 0x418   :  { %v703_v46 = vadd.f32 1e-05, %v695_v42  ;;  %v704_v57 = vadd.f32 1e-05, %v696_v52  ;;  %p1692_p5 = pnand %p1691_p4, %p1685_p1 }
 0x419   :  { %v689_v48 = vpop.xlane.xlu1 %688 }
 0x41a   :  { %1616 = vrsqrt.f32 %v703_v46  ;;  %v697_v49 = vmul.f32 0.03125, %v689_v48 }
 0x41b   :  { %v1609_v50 = vpop.eup %1608  ;;  %1618 = vrsqrt.f32 %v702_v45 }
 0x41c   :  { %v714_v53 = vmul.f32 %v1609_v50, %v1794_v20  ;;  %v705_v55 = vadd.f32 1e-05, %v697_v49 }
 0x41e   :  { %v722_v59 = vmul.f32 %v714_v53, %v69_v54  ;;  %1620 = vrsqrt.f32 %v705_v55 }
 0x41f   :  { %v1611_v56 = vpop.eup %1610  ;;  %1622 = vrsqrt.f32 %v704_v57 }
 0x420   :  { %v715_v58 = vmul.f32 %v1611_v56, %v1800_v28  ;;  %v1613_v60 = vpop.eup %1612  ;;  %v730_v20 = vadd.f32 %v722_v59, %v70_v61 }
 0x421   :  { %v716_v1 = vmul.f32 %v1613_v60, %v1792_v19 }
 0x422   :  { %v723_v62 = vmul.f32 %v715_v58, %v69_v54 }
 0x423   :  { %v1615_v63 = vpop.eup %1614  ;;  %v724_v28 = vmul.f32 %v716_v1, %v69_v54 }
 0x424   :  { %v731_v0 = vadd.f32 %v723_v62, %v70_v61  ;;  %v717_v2 = vmul.f32 %v1615_v63, %v1798_v27 }
 0x425   :  { %v732_v9 = vadd.f32 %v724_v28, %v70_v61 }
 0x426   :  { %v738_v3 = vpack.c.bf16 %v731_v0, %v730_v20  ;;  %v725_v4 = vmul.f32 %v717_v2, %v69_v54 }
 0x427   :  { %v1617_v5 = vpop.eup %1616 }
 0x428   :  { %988 = vmatmul.mubr.bf16.vlgmr.msra.gmra.mxu1 %v738_v3  ;;  %1061 = vmatmul.mubr.bf16.vlgmr.msra.gmra.mxu0 %v738_v3  ;;  %v1619_v6 = vpop.eup %1618  ;;  %v733_v7 = vadd.f32 %v725_v4, %v70_v61  ;;  %v719_v8 = vmul.f32 %v1617_v5, %v1812_v43 }
 0x429   :  { %997 = vmatprep.mubr.bf16.mxu1 %v1718_v23  ;;  %1070 = vmatprep.mubr.bf16.mxu0 %v1718_v23  ;;  %v718_v10 = vmul.f32 %v1619_v6, %v1806_v34 }
 0x42a   :  { %v739_v19 = vpack.c.bf16 %v733_v7, %v732_v9  ;;  %v727_v11 = vmul.f32 %v719_v8, %v69_v54 }
 0x42b   :  { %v1621_v27 = vpop.eup %1620  ;;  %v726_v14 = vmul.f32 %v718_v10, %v69_v54 }
 0x42c   :  { %v1623_v13 = vpop.eup %1622  ;;  %v735_v15 = vadd.f32 %v727_v11, %v70_v61  ;;  %v721_v16 = vmul.f32 %v1621_v27, %v1820_v51  ;;  %v777_v51 = vsub.s32 0, %v776_v26 }
 0x42d   :  { %v734_v17 = vadd.f32 %v726_v14, %v70_v61  ;;  %v720_v43 = vmul.f32 %v1623_v13, %v1814_v44  ;;  %v789_v44 = vsub.s32 3, %v776_v26 }
 0x42e   :  { %v729_v21 = vmul.f32 %v721_v16, %v69_v54  ;;  %v1850_v32 = vrot.slane %v1231_v31, %v777_v51 }
 0x42f   :  { %v740_v18 = vpack.c.bf16 %v735_v15, %v734_v17  ;;  %v728_v34 = vmul.f32 %v720_v43, %v69_v54  ;;  %v1856_v35 = vrot.slane %v1231_v31, %v789_v44 }
 0x430   :  { %998 = vmatmul.mubr.bf16.gmra.mxu1 %v739_v19  ;;  %1071 = vmatmul.mubr.bf16.gmra.mxu0 %v739_v19  ;;  %v737_v22 = vadd.f32 %v729_v21, %v70_v61 }
 0x431   :  { %1007 = vmatprep.mubr.bf16.mxu1 %v1718_v23  ;;  %1080 = vmatprep.mubr.bf16.mxu0 %v1718_v23  ;;  %v736_v24 = vadd.f32 %v728_v34, %v70_v61 }
 0x433   :  { %v741_v25 = vpack.c.bf16 %v737_v22, %v736_v24 }
 0x438   :  { %1008 = vmatmul.mubr.bf16.gmra.mxu1 %v740_v18  ;;  %1081 = vmatmul.mubr.bf16.gmra.mxu0 %v740_v18 }
 0x439   :  { %1017 = vmatprep.mubr.bf16.mxu1 %v1718_v23  ;;  %1090 = vmatprep.mubr.bf16.mxu0 %v1718_v23  ;;  %v1854_v23 = vrot.slane %v1231_v31, %v781_v30 }
 0x440   :  { %1018 = vmatmul.mubr.bf16.gmra.mxu1 %v741_v25  ;;  %1091 = vmatmul.mubr.bf16.gmra.mxu0 %v741_v25 }
 0x4e8   :  { %v989_v36 = vpop.f32.mrf.mxu1  ;;  %v1062_v37 = vpop.f32.mrf.mxu0 }
 0x4e9   :  { %v990_v39 = vadd.f32 %v989_v36, %v1850_v32  ;;  %v1063_v40 = vadd.f32 %v1062_v37, %v1852_v33 }
 0x4ea   :  { %v991_v38 = vpop.f32.mrf.mxu1  ;;  %v1064_v12 = vpop.f32.mrf.mxu0 }
 0x4eb   :  { %v992_v41 = vadd.f32 %v991_v38, %v1854_v23  ;;  %v1065_v42 = vadd.f32 %v1064_v12, %v1856_v35 }
 0x4ec   :  { %v993_v45 = vpop.f32.mrf.mxu1  ;;  %v1066_v46 = vpop.f32.mrf.mxu0 }
 0x4ed   :  { %v1330_v47 = vpack.c.bf16 %v992_v41, %v990_v39  ;;  %v1331_v48 = vpack.c.bf16 %v1065_v42, %v1063_v40  ;;  %v994_v52 = vadd.f32 %v993_v45, %v1850_v32  ;;  %v1067_v53 = vadd.f32 %v1066_v46, %v1852_v33 }
 0x4ee   :  { %v995_v49 = vpop.f32.mrf.mxu1  ;;  %v1068_v50 = vpop.f32.mrf.mxu0 }
 0x4ef   :  { %1197 = vst [vmem:[#allocation8] sm:$0xff] %v1330_v47  ;;  %1198 = vst [vmem:[#allocation8 + $0x8] sm:$0xff] %v1331_v48  ;;  %v996_v54 = vadd.f32 %v995_v49, %v1854_v23  ;;  %v1069_v55 = vadd.f32 %v1068_v50, %v1856_v35 }
 0x4f0   :  { %v999_v56 = vpop.f32.mrf.mxu1  ;;  %v1072_v57 = vpop.f32.mrf.mxu0 }
 0x4f1   :  { %v1332_v58 = vpack.c.bf16 %v996_v54, %v994_v52  ;;  %v1333_v59 = vpack.c.bf16 %v1069_v55, %v1067_v53  ;;  %v1000_v62 = vadd.f32 %v999_v56, %v1850_v32  ;;  %v1073_v63 = vadd.f32 %v1072_v57, %v1852_v33 }
 0x4f2   :  { %v1001_v60 = vpop.f32.mrf.mxu1  ;;  %v1074_v61 = vpop.f32.mrf.mxu0 }
 0x4f3   :  { %1199 = vst [vmem:[#allocation8 + $0x10] sm:$0xff] %v1332_v58  ;;  %1200 = vst [vmem:[#allocation8 + $0x18] sm:$0xff] %v1333_v59  ;;  %v1002_v20 = vadd.f32 %v1001_v60, %v1854_v23  ;;  %v1075_v0 = vadd.f32 %v1074_v61, %v1856_v35 }
 0x4f4   :  { %v1003_v1 = vpop.f32.mrf.mxu1  ;;  %v1076_v2 = vpop.f32.mrf.mxu0 }
 0x4f5   :  { %v1334_v3 = vpack.c.bf16 %v1002_v20, %v1000_v62  ;;  %v1335_v4 = vpack.c.bf16 %v1075_v0, %v1073_v63  ;;  %v1004_v6 = vadd.f32 %v1003_v1, %v1850_v32  ;;  %v1077_v7 = vadd.f32 %v1076_v2, %v1852_v33 }
 0x4f6   :  { %v1005_v5 = vpop.f32.mrf.mxu1  ;;  %v1078_v28 = vpop.f32.mrf.mxu0 }
 0x4f7   :  { %1201 = vst [vmem:[#allocation8 + $0x20] sm:$0xff] %v1334_v3  ;;  %1202 = vst [vmem:[#allocation8 + $0x28] sm:$0xff] %v1335_v4  ;;  %v1006_v8 = vadd.f32 %v1005_v5, %v1854_v23  ;;  %v1079_v9 = vadd.f32 %v1078_v28, %v1856_v35 }
 0x4f8   :  { %v1009_v10 = vpop.f32.mrf.mxu1  ;;  %v1082_v19 = vpop.f32.mrf.mxu0 }
 0x4f9   :  { %v1336_v11 = vpack.c.bf16 %v1006_v8, %v1004_v6  ;;  %v1337_v27 = vpack.c.bf16 %v1079_v9, %v1077_v7  ;;  %v1010_v15 = vadd.f32 %v1009_v10, %v1850_v32  ;;  %v1083_v16 = vadd.f32 %v1082_v19, %v1852_v33 }
 0x4fa   :  { %v1011_v13 = vpop.f32.mrf.mxu1  ;;  %v1084_v14 = vpop.f32.mrf.mxu0 }
 0x4fb   :  { %1203 = vst [vmem:[#allocation8 + $0x30] sm:$0xff] %v1336_v11  ;;  %1204 = vst [vmem:[#allocation8 + $0x38] sm:$0xff] %v1337_v27  ;;  %v1012_v17 = vadd.f32 %v1011_v13, %v1854_v23  ;;  %v1085_v43 = vadd.f32 %v1084_v14, %v1856_v35 }
 0x4fc   :  { %v1013_v18 = vpop.f32.mrf.mxu1  ;;  %v1086_v21 = vpop.f32.mrf.mxu0 }
 0x4fd   :  { %v1338_v34 = vpack.c.bf16 %v1012_v17, %v1010_v15  ;;  %v1339_v22 = vpack.c.bf16 %v1085_v43, %v1083_v16  ;;  %v1014_v26 = vadd.f32 %v1013_v18, %v1850_v32  ;;  %v1087_v51 = vadd.f32 %v1086_v21, %v1852_v33 }
 0x4fe   :  { %v1015_v24 = vpop.f32.mrf.mxu1  ;;  %v1088_v25 = vpop.f32.mrf.mxu0 }
 0x4ff   :  { %1205 = vst [vmem:[#allocation8 + $0x40] sm:$0xff] %v1338_v34  ;;  %1206 = vst [vmem:[#allocation8 + $0x48] sm:$0xff] %v1339_v22  ;;  %v1016_v29 = vadd.f32 %v1015_v24, %v1854_v23  ;;  %v1089_v30 = vadd.f32 %v1088_v25, %v1856_v35 }
 0x500   :  { %v1019_v44 = vpop.f32.mrf.mxu1  ;;  %v1092_v31 = vpop.f32.mrf.mxu0 }
 0x501   :  { %v1340_v36 = vpack.c.bf16 %v1016_v29, %v1014_v26  ;;  %v1341_v37 = vpack.c.bf16 %v1089_v30, %v1087_v51  ;;  %v1020_v39 = vadd.f32 %v1019_v44, %v1850_v32  ;;  %v1093_v40 = vadd.f32 %v1092_v31, %v1852_v33 }
 0x502   :  { %v1021_v38 = vpop.f32.mrf.mxu1  ;;  %v1094_v12 = vpop.f32.mrf.mxu0 }
 0x503   :  { %1207 = vst [vmem:[#allocation8 + $0x50] sm:$0xff] %v1340_v36  ;;  %1208 = vst [vmem:[#allocation8 + $0x58] sm:$0xff] %v1341_v37  ;;  %v1022_v41 = vadd.f32 %v1021_v38, %v1854_v23  ;;  %v1095_v42 = vadd.f32 %v1094_v12, %v1856_v35 }
 0x504   :  { %v1023_v45 = vpop.f32.mrf.mxu1  ;;  %v1096_v46 = vpop.f32.mrf.mxu0 }
 0x505   :  { %v1342_v47 = vpack.c.bf16 %v1022_v41, %v1020_v39  ;;  %v1343_v48 = vpack.c.bf16 %v1095_v42, %v1093_v40  ;;  %v1024_v52 = vadd.f32 %v1023_v45, %v1850_v32  ;;  %v1097_v53 = vadd.f32 %v1096_v46, %v1852_v33 }
 0x506   :  { %v1025_v49 = vpop.f32.mrf.mxu1  ;;  %v1098_v50 = vpop.f32.mrf.mxu0 }
 0x507   :  { %1209 = vst [vmem:[#allocation8 + $0x60] sm:$0xff] %v1342_v47  ;;  %1210 = vst [vmem:[#allocation8 + $0x68] sm:$0xff] %v1343_v48  ;;  %v1026_v54 = vadd.f32 %v1025_v49, %v1854_v23  ;;  %v1099_v55 = vadd.f32 %v1098_v50, %v1856_v35 }
 0x509   :  { %v1344_v56 = vpack.c.bf16 %v1026_v54, %v1024_v52  ;;  %v1345_v57 = vpack.c.bf16 %v1099_v55, %v1097_v53 }
 0x50b   :  { %1211 = vst [vmem:[#allocation8 + $0x70] sm:$0xff] %v1344_v56  ;;  %1212 = vst [vmem:[#allocation8 + $0x78] sm:$0xff] %v1345_v57 }
 0x50c   :  { %1695 = shalt.err (!%p1692_p5)
}
 0x50d   :  { %1224 = dma.vmem_to_hbm [thread:$0]  %s1219_s9, 2048, %s1902_s6, [#allocation4], %s1715_s3, %s1715_s3, %s1716_s12  }
 0x50e   :  { %1708 = dma.done.wait [#allocation4], 2048  }
 0x50f   :  { %1709 = vsyncadd [#allocation4], 4294965248 }
 0x510   :  { %1228 = vsyncpa [#allocation3], 1 }
 0x511   :  { %1229 = vsyncpa [#allocation6], 1 }
 0x512   :  { %1230 = vsyncpa [#allocation4], 1 }

</bundles_post_ra>
